<compile_context>
chip_gen: v7x
topology: tpu7x:2x2x1
jax: 0.10.0
libtpu: 0.0.40
codegen_flags: <defaults>
</compile_context>

<pallas_src>
import functools

import jax
import jax.numpy as jnp
from jax.experimental import pallas as pl
from jax.experimental.pallas import tpu as pltpu

_LOG2 = 0.6931471805599453

# VMEM budget used for tile sizing. Chosen to fit v7x (64 MiB physical / 32 MiB
# scoped default) with headroom; v5e/v6e (128 MiB) are already HBM-streaming
# bound at this tile size so they lose nothing.
_VMEM_TILE_BUDGET = 48 << 20


def _shifted_softplus(x):
    # softplus(x) - log(2), numerically stable; exactly one exp + one log1p
    # per element (single-slot EUP friendly). Exactly 0 at x == 0.
    return jnp.maximum(x, 0.0) + jnp.log1p(jnp.exp(-jnp.abs(x))) - _LOG2


def _round_up(v, m):
    return ((v + m - 1) // m) * m


def _residual_kernel(x_ref, w1t_ref, b1_ref, w2t_ref, b2_ref, o_ref):
    x = x_ref[...].astype(jnp.float32)

    y = _shifted_softplus(x)
    # linear1: y @ W1.T + b1 — W1 is pre-transposed in the wrapper, so no
    # in-kernel .T on the resident weight block.
    y = jnp.dot(y, w1t_ref[...], preferred_element_type=jnp.float32)
    y = y + b1_ref[...]

    y = _shifted_softplus(y)
    # linear2: y @ W2.T + b2
    y = jnp.dot(y, w2t_ref[...], preferred_element_type=jnp.float32)
    y = y + b2_ref[...]

    o_ref[...] = (x + y).astype(o_ref.dtype)


def _resident_spec(shape):
    """BlockSpec for a grid-invariant (resident) operand, single-buffered."""
    index_map = lambda i: (0, 0)
    try:
        return pl.BlockSpec(shape, index_map, pipeline_mode=pl.Buffered(1))
    except (AttributeError, TypeError):
        # Older Pallas without pipeline_mode / Buffered: fall back to default.
        return pl.BlockSpec(shape, index_map)


def _pick_tile_n(n, fp, budget):
    """Largest row tile (multiple of 8) fitting the VMEM budget."""
    # Resident, single-buffered operands: 2 weights + 2 biases (f32).
    resident = 2 * fp * fp * 4 + 2 * fp * 4
    # Per-row cost: x + out double-buffered (4 tiles) + ~2 f32 intermediates.
    per_row = 6 * fp * 4
    avail = max(budget - resident, 8 * per_row)
    tile = max(8, min(avail // per_row, 1024))
    tile = (tile // 8) * 8
    # Don't exceed the (row-padded) problem size.
    tile = min(tile, _round_up(n, 8))
    return int(tile)


@functools.partial(jax.jit, static_argnames=("tile_n",))
def residual_forward(x, w1, b1, w2, b2, *, tile_n=None):
    """Pallas residual block. x: [N, F]; w*: [F, F] (out,in); b*: [F]."""
    n, f = x.shape

    # Lane-dense layout: pad features to a multiple of 128.
    fp = max(128, _round_up(f, 128))
    tile = tile_n if tile_n is not None else _pick_tile_n(n, fp, _VMEM_TILE_BUDGET)
    npad = _round_up(n, tile)

    xf = jnp.pad(x, ((0, npad - n), (0, fp - f)))
    # Pre-transpose weights once: [out, in] -> [in, out], zero-padded.
    w1t = jnp.pad(w1.T, ((0, fp - f), (0, fp - f)))
    w2t = jnp.pad(w2.T, ((0, fp - f), (0, fp - f)))
    b1p = jnp.pad(b1.reshape(1, f), ((0, 0), (0, fp - f)))
    b2p = jnp.pad(b2.reshape(1, f), ((0, 0), (0, fp - f)))

    grid = (npad // tile,)

    cost = pl.CostEstimate(
        flops=4 * n * f * f,             # two N x F x F matmuls
        transcendentals=4 * n * f,       # exp + log1p, two activations
        bytes_accessed=(2 * n * f + 2 * f * f + 2 * f) * x.dtype.itemsize,
    )

    # Explicit VMEM limit: resident weights (single-buffered) + streamed tiles
    # + slack, clamped to <= 64 MiB so it is valid on v7x as well.
    vmem_need = 2 * fp * fp * 4 + 2 * fp * 4 + 6 * tile * fp * 4 + (2 << 20)
    vmem_limit = int(min(max(2 * vmem_need, 32 << 20), 64 << 20))

    out = pl.pallas_call(
        _residual_kernel,
        out_shape=jax.ShapeDtypeStruct((npad, fp), x.dtype),
        grid_spec=pltpu.PrefetchScalarGridSpec(
            num_scalar_prefetch=0,
            grid=grid,
            in_specs=[
                pl.BlockSpec((tile, fp), lambda i: (i, 0)),  # x tile (streamed)
                _resident_spec((fp, fp)),                    # W1^T (resident)
                _resident_spec((1, fp)),                     # b1
                _resident_spec((fp, fp)),                    # W2^T (resident)
                _resident_spec((1, fp)),                     # b2
            ],
            out_specs=pl.BlockSpec((tile, fp), lambda i: (i, 0)),
        ),
        compiler_params=pltpu.CompilerParams(
            # Keep the row grid parallel so v7x's 2 TCs shard it; for large N
            # the auto tile keeps >= a few grid steps so both cores stream HBM.
            dimension_semantics=("parallel",),
            vmem_limit_bytes=vmem_limit,
        ),
        cost_estimate=cost,
    )(xf, w1t, b1p, w2t, b2p)

    return out[:n, :f]


def init_residual_params(key, num_features, bias=True, zero_init=True,
                         dtype=jnp.float32):
    """Deterministic init matching Residual.reset_parameters:
    - linear1.weight: orthogonal
    - linear2.weight: zeros (zero_init=True) else orthogonal
    - biases: zeros
    """
    k1, k2 = jax.random.split(key)
    a1 = jax.random.normal(k1, (num_features, num_features), dtype=jnp.float32)
    q1, r1 = jnp.linalg.qr(a1)
    q1 = q1 * jnp.sign(jnp.diag(r1))[None, :]
    w1 = q1.astype(dtype)

    if zero_init:
        w2 = jnp.zeros((num_features, num_features), dtype=dtype)
    else:
        a2 = jax.random.normal(k2, (num_features, num_features),
                               dtype=jnp.float32)
        q2, r2 = jnp.linalg.qr(a2)
        q2 = q2 * jnp.sign(jnp.diag(r2))[None, :]
        w2 = q2.astype(dtype)

    b1 = jnp.zeros((num_features,), dtype=dtype)
    b2 = jnp.zeros((num_features,), dtype=dtype)
    return w1, b1, w2, b2


def _reference_forward(x, w1, b1, w2, b2):
    y = _shifted_softplus(x)
    y = y @ w1.T + b1
    y = _shifted_softplus(y)
    y = y @ w2.T + b2
    return x + y


if __name__ == "__main__":
    key = jax.random.PRNGKey(0)
    k_x, k_p1, k_p2 = jax.random.split(key, 3)

    N = 64          # number of atoms
    F = 32          # num_features

    x = jax.random.normal(k_x, (N, F), dtype=jnp.float32)

    # Case 1: default init (zero_init=True) -> exact identity mapping.
    w1, b1, w2, b2 = init_residual_params(k_p1, F, bias=True, zero_init=True)
    out = jax.block_until_ready(residual_forward(x, w1, b1, w2, b2))
    assert jnp.allclose(out, x, atol=1e-6), "zero_init should be identity"

    # Case 2: non-trivial weights (zero_init=False) vs pure-JAX reference.
    w1, b1, w2, b2 = init_residual_params(k_p2, F, bias=True, zero_init=False)
    out = jax.block_until_ready(residual_forward(x, w1, b1, w2, b2))
    ref = _reference_forward(x, w1, b1, w2, b2)
    assert jnp.allclose(out, ref, atol=1e-5, rtol=1e-5), "mismatch vs reference"

    print("KERNEL_OK")
</pallas_src>

<mosaic_0001>
module attributes {stable_mosaic.version = 11 : i64} {
  func.func @_residual_kernel(%arg0: i32, %arg1: memref<64x128xf32, #tpu.memory_space<vmem>>, %arg2: memref<128x128xf32, #tpu.memory_space<vmem>>, %arg3: memref<1x128xf32, #tpu.memory_space<vmem>>, %arg4: memref<128x128xf32, #tpu.memory_space<vmem>>, %arg5: memref<1x128xf32, #tpu.memory_space<vmem>>, %arg6: memref<64x128xf32, #tpu.memory_space<vmem>>) attributes {dimension_semantics = [#tpu.dimension_semantics<parallel>], iteration_bounds = array<i64: 1>, scalar_prefetch = 0 : i64, scratch_operands = 0 : i64, tpu.core_type = #tpu.core_type<tc>, window_params = [{transform_indices = @transform_0, window_bounds = array<i64: 64, 128>}, {pipeline_mode = #tpu.pipeline_mode<synchronous>, transform_indices = @transform_1, window_bounds = array<i64: 128, 128>}, {pipeline_mode = #tpu.pipeline_mode<synchronous>, transform_indices = @transform_2, window_bounds = array<i64: 1, 128>}, {pipeline_mode = #tpu.pipeline_mode<synchronous>, transform_indices = @transform_3, window_bounds = array<i64: 128, 128>}, {pipeline_mode = #tpu.pipeline_mode<synchronous>, transform_indices = @transform_4, window_bounds = array<i64: 1, 128>}, {transform_indices = @transform_5, window_bounds = array<i64: 64, 128>}]} {
    %c0 = arith.constant 0 : index
    %c0_0 = arith.constant 0 : index
    %0 = vector.load %arg1[%c0, %c0_0] : memref<64x128xf32, #tpu.memory_space<vmem>>, vector<64x128xf32>
    %cst = arith.constant 0.000000e+00 : f32
    %1 = vector.broadcast %cst : f32 to vector<64x128xf32>
    %2 = arith.maximumf %0, %1 : vector<64x128xf32>
    %3 = math.absf %0 : vector<64x128xf32>
    %cst_1 = arith.constant 0.000000e+00 : f32
    %4 = vector.broadcast %cst_1 : f32 to vector<64x128xf32>
    %5 = arith.subf %4, %3 : vector<64x128xf32>
    %6 = math.exp %5 : vector<64x128xf32>
    %7 = math.log1p %6 : vector<64x128xf32>
    %8 = arith.addf %2, %7 : vector<64x128xf32>
    %cst_2 = arith.constant 0.693147182 : f32
    %9 = vector.broadcast %cst_2 : f32 to vector<64x128xf32>
    %10 = arith.subf %8, %9 : vector<64x128xf32>
    %c0_3 = arith.constant 0 : index
    %c0_4 = arith.constant 0 : index
    %11 = vector.load %arg2[%c0_3, %c0_4] : memref<128x128xf32, #tpu.memory_space<vmem>>, vector<128x128xf32>
    %cst_5 = arith.constant dense<0.000000e+00> : vector<64x128xf32>
    %12 = tpu.matmul %10, %11, %cst_5 {dimension_numbers = #tpu.dot_dimension_numbers<[1], [0], [0], [1], [0, 0, 1, 1], [], []>} : vector<64x128xf32>, vector<128x128xf32>, vector<64x128xf32> -> vector<64x128xf32>
    %c0_6 = arith.constant 0 : index
    %c0_7 = arith.constant 0 : index
    %13 = vector.load %arg3[%c0_6, %c0_7] : memref<1x128xf32, #tpu.memory_space<vmem>>, vector<1x128xf32>
    %14 = vector.broadcast %13 : vector<1x128xf32> to vector<64x128xf32>
    %15 = arith.addf %12, %14 : vector<64x128xf32>
    %cst_8 = arith.constant 0.000000e+00 : f32
    %16 = vector.broadcast %cst_8 : f32 to vector<64x128xf32>
    %17 = arith.maximumf %15, %16 : vector<64x128xf32>
    %18 = math.absf %15 : vector<64x128xf32>
    %cst_9 = arith.constant 0.000000e+00 : f32
    %19 = vector.broadcast %cst_9 : f32 to vector<64x128xf32>
    %20 = arith.subf %19, %18 : vector<64x128xf32>
    %21 = math.exp %20 : vector<64x128xf32>
    %22 = math.log1p %21 : vector<64x128xf32>
    %23 = arith.addf %17, %22 : vector<64x128xf32>
    %cst_10 = arith.constant 0.693147182 : f32
    %24 = vector.broadcast %cst_10 : f32 to vector<64x128xf32>
    %25 = arith.subf %23, %24 : vector<64x128xf32>
    %c0_11 = arith.constant 0 : index
    %c0_12 = arith.constant 0 : index
    %26 = vector.load %arg4[%c0_11, %c0_12] : memref<128x128xf32, #tpu.memory_space<vmem>>, vector<128x128xf32>
    %cst_13 = arith.constant dense<0.000000e+00> : vector<64x128xf32>
    %27 = tpu.matmul %25, %26, %cst_13 {dimension_numbers = #tpu.dot_dimension_numbers<[1], [0], [0], [1], [0, 0, 1, 1], [], []>} : vector<64x128xf32>, vector<128x128xf32>, vector<64x128xf32> -> vector<64x128xf32>
    %c0_14 = arith.constant 0 : index
    %c0_15 = arith.constant 0 : index
    %28 = vector.load %arg5[%c0_14, %c0_15] : memref<1x128xf32, #tpu.memory_space<vmem>>, vector<1x128xf32>
    %29 = vector.broadcast %28 : vector<1x128xf32> to vector<64x128xf32>
    %30 = arith.addf %27, %29 : vector<64x128xf32>
    %31 = arith.addf %0, %30 : vector<64x128xf32>
    %c0_16 = arith.constant 0 : index
    %c0_17 = arith.constant 0 : index
    %32 = vector.load %arg6[%c0_16, %c0_17] : memref<64x128xf32, #tpu.memory_space<vmem>>, vector<64x128xf32>
    tpu.vector_store %arg6[%c0_16, %c0_17], %31 {strides = array<i32>} : memref<64x128xf32, #tpu.memory_space<vmem>>, vector<64x128xf32>,
    return
  }
  func.func @transform_0(%arg0: i32) -> (i32, i32) {
    %c0_i32 = arith.constant 0 : i32
    %c0_i32_0 = arith.constant 0 : i32
    return %arg0, %c0_i32 : i32, i32
  }
  func.func @transform_1(%arg0: i32) -> (i32, i32) {
    %c0_i32 = arith.constant 0 : i32
    %c0_i32_0 = arith.constant 0 : i32
    %c0_i32_1 = arith.constant 0 : i32
    return %c0_i32, %c0_i32_0 : i32, i32
  }
  func.func @transform_2(%arg0: i32) -> (i32, i32) {
    %c0_i32 = arith.constant 0 : i32
    %c0_i32_0 = arith.constant 0 : i32
    %c0_i32_1 = arith.constant 0 : i32
    return %c0_i32, %c0_i32_0 : i32, i32
  }
  func.func @transform_3(%arg0: i32) -> (i32, i32) {
    %c0_i32 = arith.constant 0 : i32
    %c0_i32_0 = arith.constant 0 : i32
    %c0_i32_1 = arith.constant 0 : i32
    return %c0_i32, %c0_i32_0 : i32, i32
  }
  func.func @transform_4(%arg0: i32) -> (i32, i32) {
    %c0_i32 = arith.constant 0 : i32
    %c0_i32_0 = arith.constant 0 : i32
    %c0_i32_1 = arith.constant 0 : i32
    return %c0_i32, %c0_i32_0 : i32, i32
  }
  func.func @transform_5(%arg0: i32) -> (i32, i32) {
    %c0_i32 = arith.constant 0 : i32
    %c0_i32_0 = arith.constant 0 : i32
    return %arg0, %c0_i32 : i32, i32
  }
}

</mosaic_0001>

<bundles_post_ra>
// kernel: residual_forward.1
= control target key start
LH: loop header
LB: loop body
LE: loop exit
PB: predicated region body
PF: predicated region fallthrough
CT: control target
= control target key end

     0   :  { %s1212_s1 = inlined_call_operand.vmem [shape: f32[128,128], index: 1, kind: input, shape index: {}]   ;;  %s1213_s0 = inlined_call_operand.vmem [shape: f32[64,128], index: 0, kind: input, shape index: {}]   ;;  %s1214_s3 = inlined_call_operand.vmem [shape: f32[128,128], index: 3, kind: input, shape index: {}]   ;;  %s1215_s2 = inlined_call_operand.vmem [shape: f32[1,128], index: 2, kind: input, shape index: {}]   ;;  %s1216_s4 = inlined_call_operand.vmem [shape: f32[1,128], index: 4, kind: input, shape index: {}]   ;;  %s1217_s5 = inlined_call_operand.vmem [shape: f32[64,128], index: 5, kind: output, shape index: {}]  }
   0x1   :  { %v156_v0 = vld [vmem:[%s1212_s1] sm:$0xff]  ;;  %v157_v1 = vld [vmem:[%s1212_s1 + $0x8] sm:$0xff]  ;;  %v158_v2 = vld [vmem:[%s1212_s1 + $0x10] sm:$0xff] }
   0x2   :  { %v714_v3 = vpack.c.bf16 %v157_v1, %v156_v0  ;;  %v159_v4 = vld [vmem:[%s1212_s1 + $0x18] sm:$0xff]  ;;  %v160_v6 = vld [vmem:[%s1212_s1 + $0x20] sm:$0xff]  ;;  %v161_v7 = vld [vmem:[%s1212_s1 + $0x28] sm:$0xff] }
   0x3   :  { %v718_v5 = vpack.c.bf16 %v159_v4, %v158_v2  ;;  %v722_v8 = vpack.c.bf16 %v161_v7, %v160_v6  ;;  %v162_v9 = vld [vmem:[%s1212_s1 + $0x30] sm:$0xff]  ;;  %v896_v10 = vld [vmem:[%s1213_s0] sm:$0xff]  ;;  %v901_v11 = vld [vmem:[%s1213_s0 + $0x8] sm:$0xff] }
   0x4   :  { %715 = vmatprep.subr.bf16.mxu0 %v714_v3  ;;  %v163_v12 = vld [vmem:[%s1212_s1 + $0x38] sm:$0xff]  ;;  %v36_v13 = vand.u32 2147483647, %v896_v10  ;;  %v910_v14 = vld [vmem:[%s1213_s0 + $0x10] sm:$0xff]  ;;  %v37_v16 = vand.u32 2147483647, %v901_v11 }
   0x5   :  { %717 = vmatpush3.bf16.msra.mxu0 %v714_v3  ;;  %v915_v15 = vld [vmem:[%s1213_s0 + $0x18] sm:$0xff]  ;;  %v38_v17 = vand.u32 2147483647, %v910_v14  ;;  %v164_v18 = vld [vmem:[%s1212_s1 + $0x40] sm:$0xff]  ;;  %v931_v22 = vld [vmem:[%s1213_s0 + $0x28] sm:$0xff]  ;;  %v726_v23 = vpack.c.bf16 %v163_v12, %v162_v9  ;;  %v28_v2 = vmax.f32 %v896_v10, 0.0 }
   0x6   :  { %719 = vmatprep.subr.bf16.mxu0 %v718_v5  ;;  %v44_v19 = vsub.f32 0.0, %v36_v13  ;;  %v39_v20 = vand.u32 2147483647, %v915_v15  ;;  %v926_v21 = vld [vmem:[%s1213_s0 + $0x20] sm:$0xff]  ;;  %v165_v24 = vld [vmem:[%s1212_s1 + $0x48] sm:$0xff]  ;;  %v45_v25 = vsub.f32 0.0, %v37_v16 }
   0x7   :  { %v46_v26 = vsub.f32 0.0, %v38_v17  ;;  %v40_v27 = vand.u32 2147483647, %v926_v21  ;;  %v940_v28 = vld [vmem:[%s1213_s0 + $0x30] sm:$0xff]  ;;  %v41_v31 = vand.u32 2147483647, %v931_v22  ;;  %v730_v39 = vpack.c.bf16 %v165_v24, %v164_v18 }
   0x8   :  { %v52_v29 = vmul.f32 1.442695, %v44_v19  ;;  %v47_v30 = vsub.f32 0.0, %v39_v20  ;;  %v946_v32 = vld [vmem:[%s1213_s0 + $0x38] sm:$0xff]  ;;  %v54_v33 = vmul.f32 1.442695, %v45_v25 }
   0x9   :  { %721 = vmatpush3.bf16.msra.mxu0 %v718_v5  ;;  %v56_v34 = vmul.f32 1.442695, %v46_v26  ;;  %v48_v35 = vsub.f32 0.0, %v40_v27  ;;  %v49_v37 = vsub.f32 0.0, %v41_v31  ;;  %v42_v38 = vand.u32 2147483647, %v940_v28 }
   0xa   :  { %723 = vmatprep.subr.bf16.mxu0 %v722_v8  ;;  %778 = vpow2.f32 %v52_v29  ;;  %v58_v36 = vmul.f32 1.442695, %v47_v30  ;;  %v43_v41 = vand.u32 2147483647, %v946_v32  ;;  %v166_v42 = vld [vmem:[%s1212_s1 + $0x50] sm:$0xff]  ;;  %v167_v43 = vld [vmem:[%s1212_s1 + $0x58] sm:$0xff] }
   0xb   :  { %780 = vpow2.f32 %v54_v33  ;;  %v60_v40 = vmul.f32 1.442695, %v48_v35  ;;  %v62_v44 = vmul.f32 1.442695, %v49_v37  ;;  %v50_v45 = vsub.f32 0.0, %v42_v38  ;;  %v168_v50 = vld [vmem:[%s1212_s1 + $0x60] sm:$0xff] }
   0xc   :  { %782 = vpow2.f32 %v56_v34  ;;  %v51_v46 = vsub.f32 0.0, %v43_v41  ;;  %v734_v48 = vpack.c.bf16 %v167_v43, %v166_v42  ;;  %v169_v51 = vld [vmem:[%s1212_s1 + $0x68] sm:$0xff]  ;;  %v170_v54 = vld [vmem:[%s1212_s1 + $0x70] sm:$0xff]  ;;  %v171_v55 = vld [vmem:[%s1212_s1 + $0x78] sm:$0xff]  ;;  %v29_v3 = vmax.f32 %v901_v11, 0.0 }
   0xd   :  { %725 = vmatpush3.bf16.msra.mxu0 %v722_v8  ;;  %784 = vpow2.f32 %v58_v36  ;;  %v64_v47 = vmul.f32 1.442695, %v50_v45  ;;  %v738_v52 = vpack.c.bf16 %v169_v51, %v168_v50  ;;  %v742_v61 = vpack.c.bf16 %v171_v55, %v170_v54 }
   0xe   :  { %727 = vmatprep.subr.bf16.mxu0 %v726_v23  ;;  %786 = vpow2.f32 %v60_v40  ;;  %v66_v49 = vmul.f32 1.442695, %v51_v46  ;;  %v30_v7 = vmax.f32 %v910_v14, 0.0  ;;  %v31_v9 = vmax.f32 %v915_v15, 0.0 }
   0xf   :  { %788 = vpow2.f32 %v62_v44  ;;  %v32_v20 = vmax.f32 %v926_v21, 0.0 }
  0x10   :  { %790 = vpow2.f32 %v64_v47 }
  0x11   :  { %729 = vmatpush3.bf16.msra.mxu0 %v726_v23  ;;  %792 = vpow2.f32 %v66_v49  ;;  %v33_v23 = vmax.f32 %v931_v22, 0.0 }
  0x12   :  { %731 = vmatprep.subr.bf16.mxu0 %v730_v39 }
  0x14   :  { %v779_v53 = vpop.eup %778 }
  0x15   :  { %733 = vmatpush3.bf16.msra.mxu0 %v730_v39  ;;  %v781_v56 = vpop.eup %780  ;;  %v68_v57 = vadd.f32 1.0, %v779_v53  ;;  %v71_v0 = vmul.f32 -0.5, %v779_v53  ;;  %v74_v6 = vand.u32 2147483647, %v779_v53 }
  0x16   :  { %735 = vmatprep.subr.bf16.mxu0 %v734_v48  ;;  %v783_v58 = vpop.eup %782  ;;  %v77_v59 = vadd.f32 1.0, %v781_v56  ;;  %v80_v1 = vmul.f32 -0.5, %v781_v56  ;;  %v83_v13 = vand.u32 2147483647, %v781_v56 }
  0x17   :  { %v785_v60 = vpop.eup %784  ;;  %794 = vlog2.f32 %v68_v57  ;;  %v86_v62 = vadd.f32 1.0, %v783_v58  ;;  %v89_v8 = vmul.f32 -0.5, %v783_v58  ;;  %v72_v18 = vadd.f32 1.0, %v71_v0 }
  0x18   :  { %v968_v63 = vpop.eup %786  ;;  %796 = vlog2.f32 %v77_v59  ;;  %v95_v4 = vadd.f32 1.0, %v785_v60  ;;  %v98_v16 = vmul.f32 -0.5, %v785_v60  ;;  %v81_v19 = vadd.f32 1.0, %v80_v1 }
  0x19   :  { %737 = vmatpush3.bf16.msra.mxu0 %v734_v48  ;;  %798 = vlog2.f32 %v86_v62  ;;  %v972_v5 = vpop.eup %788  ;;  %v104_v17 = vadd.f32 1.0, %v968_v63  ;;  %v92_v25 = vand.u32 2147483647, %v783_v58  ;;  %v107_v26 = vmul.f32 -0.5, %v968_v63 }
  0x1a   :  { %739 = vmatprep.subr.bf16.mxu0 %v738_v52  ;;  %v976_v12 = vpop.eup %790  ;;  %800 = vlog2.f32 %v95_v4  ;;  %v113_v27 = vadd.f32 1.0, %v972_v5  ;;  %vm985_vm0 = vcmp.lt.f32.partialorder %v74_v6, 0.0004427343  ;;  %v90_v30 = vadd.f32 1.0, %v89_v8 }
  0x1b   :  { %v981_v24 = vpop.eup %792  ;;  %802 = vlog2.f32 %v104_v17  ;;  %v101_v31 = vand.u32 2147483647, %v785_v60  ;;  %v122_v33 = vadd.f32 1.0, %v976_v12  ;;  %vm990_vm1 = vcmp.lt.f32.partialorder %v83_v13, 0.0004427343 }
  0x1c   :  { %v99_v35 = vadd.f32 1.0, %v98_v16  ;;  %804 = vlog2.f32 %v113_v27  ;;  %v116_v36 = vmul.f32 -0.5, %v972_v5  ;;  %v73_v37 = vmul.f32 %v779_v53, %v72_v18 }
  0x1d   :  { %741 = vmatpush3.bf16.msra.mxu0 %v738_v52  ;;  %v110_v38 = vand.u32 2147483647, %v968_v63  ;;  %806 = vlog2.f32 %v122_v33  ;;  %v131_v39 = vadd.f32 1.0, %v981_v24  ;;  %v82_v41 = vmul.f32 %v781_v56, %v81_v19  ;;  %v419_v56 = vld [vmem:[%s1214_s3 + $0x38] sm:$0xff] }
  0x1e   :  { %743 = vmatprep.subr.bf16.mxu0 %v742_v61  ;;  %vm997_vm2 = vcmp.lt.f32.partialorder %v92_v25, 0.0004427343  ;;  %v108_v43 = vadd.f32 1.0, %v107_v26  ;;  %v125_v44 = vmul.f32 -0.5, %v976_v12  ;;  %v91_v47 = vmul.f32 %v783_v58, %v90_v30 }
  0x1f   :  { %vm1002_vm3 = vcmp.lt.f32.partialorder %v101_v31, 0.0004427343  ;;  %808 = vlog2.f32 %v131_v39  ;;  %v100_v51 = vmul.f32 %v785_v60, %v99_v35  ;;  %v117_v52 = vadd.f32 1.0, %v116_v36 }
  0x20   :  { %v134_v53 = vmul.f32 -0.5, %v981_v24  ;;  %vm1009_vm4 = vcmp.lt.f32.partialorder %v110_v38, 0.0004427343  ;;  %v119_v57 = vand.u32 2147483647, %v972_v5  ;;  %v109_v60 = vmul.f32 %v968_v63, %v108_v43 }
  0x21   :  { %745 = vmatpush3.bf16.msra.mxu0 %v742_v61  ;;  %v795_v40 = vpop.eup %794  ;;  %v126_v62 = vadd.f32 1.0, %v125_v44  ;;  %v128_v6 = vand.u32 2147483647, %v976_v12  ;;  %v118_v17 = vmul.f32 %v972_v5, %v117_v52  ;;  %v137_v63 = vand.u32 2147483647, %v981_v24  ;;  %v416_v52 = vld [vmem:[%s1214_s3 + $0x20] sm:$0xff] }
  0x22   :  { %v797_v45 = vpop.eup %796  ;;  %v70_v46 = vmul.f32 0.6931472, %v795_v40  ;;  %v135_v18 = vadd.f32 1.0, %v134_v53  ;;  %vm1026_vm5 = vcmp.lt.f32.partialorder %v119_v57, 0.0004427343  ;;  %v34_v33 = vmax.f32 %v940_v28, 0.0 }
  0x23   :  { %v799_v49 = vpop.eup %798  ;;  %v79_v50 = vmul.f32 0.6931472, %v797_v45  ;;  %v127_v5 = vmul.f32 %v976_v12, %v126_v62  ;;  %vm129_vm6 = vcmp.lt.f32.partialorder %v128_v6, 0.0004427343  ;;  %v35_v38 = vmax.f32 %v946_v32, 0.0  ;;  %v417_v53 = vld [vmem:[%s1214_s3 + $0x28] sm:$0xff] }
  0x24   :  { %v76_v54 = vsel %vm985_vm0, %v73_v37, %v70_v46  ;;  %v88_v55 = vmul.f32 0.6931472, %v799_v49  ;;  %v801_v58 = vpop.eup %800  ;;  %v136_v36 = vmul.f32 %v981_v24, %v135_v18  ;;  %vm138_vm7 = vcmp.lt.f32.partialorder %v137_v63, 0.0004427343  ;;  %v414_v49 = vld [vmem:[%s1214_s3 + $0x10] sm:$0xff]  ;;  %v423_v62 = vld [vmem:[%s1214_s3 + $0x58] sm:$0xff] }
  0x25   :  { %v140_v59 = vadd.f32 %v76_v54, %v28_v2  ;;  %v85_v61 = vsel %vm990_vm1, %v82_v41, %v79_v50  ;;  %v97_v4 = vmul.f32 0.6931472, %v801_v58  ;;  %v803_v8 = vpop.eup %802  ;;  %v415_v50 = vld [vmem:[%s1214_s3 + $0x18] sm:$0xff]  ;;  %v754_v54 = vpack.c.bf16 %v417_v53, %v416_v52  ;;  %v420_v58 = vld [vmem:[%s1214_s3 + $0x40] sm:$0xff] }
  0x26   :  { %v141_v0 = vadd.f32 %v85_v61, %v29_v3  ;;  %v94_v1 = vsel %vm997_vm2, %v91_v47, %v88_v55  ;;  %v106_v25 = vmul.f32 0.6931472, %v803_v8  ;;  %v805_v3 = vpop.eup %804  ;;  %v412_v47 = vld [vmem:[%s1214_s3] sm:$0xff]  ;;  %v418_v55 = vld [vmem:[%s1214_s3 + $0x30] sm:$0xff] }
  0x27   :  { %v560_v13 = vadd.f32 -0.6931472, %v140_v59  ;;  %v142_v16 = vadd.f32 %v94_v1, %v30_v7  ;;  %v103_v19 = vsel %vm1002_vm3, %v100_v51, %v97_v4  ;;  %v807_v7 = vpop.eup %806  ;;  %v115_v31 = vmul.f32 0.6931472, %v805_v3  ;;  %v421_v59 = vld [vmem:[%s1214_s3 + $0x48] sm:$0xff]  ;;  %v422_v61 = vld [vmem:[%s1214_s3 + $0x50] sm:$0xff] }
  0x28   :  { %v561_v2 = vadd.f32 -0.6931472, %v141_v0  ;;  %v143_v27 = vadd.f32 %v103_v19, %v31_v9  ;;  %v112_v30 = vsel %vm1009_vm4, %v109_v60, %v106_v25  ;;  %v124_v35 = vmul.f32 0.6931472, %v807_v7  ;;  %v424_v1 = vld [vmem:[%s1214_s3 + $0x60] sm:$0xff]  ;;  %v425_v4 = vld [vmem:[%s1214_s3 + $0x68] sm:$0xff] }
  0x29   :  { %658 = vmatprep.mubr.f32.mxu0 %v560_v13  ;;  %v562_v26 = vadd.f32 -0.6931472, %v142_v16  ;;  %v144_v9 = vadd.f32 %v112_v30, %v32_v20  ;;  %v809_v37 = vpop.eup %808  ;;  %v121_v12 = vsel %vm1026_vm5, %v118_v17, %v115_v31  ;;  %v750_v51 = vpack.c.bf16 %v415_v50, %v414_v49  ;;  %v426_v8 = vld [vmem:[%s1214_s3 + $0x70] sm:$0xff]  ;;  %v427_v13 = vld [vmem:[%s1214_s3 + $0x78] sm:$0xff]  ;;  %v568_v17 = vld [vmem:[%s1215_s2] ss:$0 sm:$0xff] }
  0x2a   :  { %659 = vmatmul.mubr.f32.vlgmr.msra.gmra.mrb[0].mxu0 %v561_v2  ;;  %v563_v34 = vadd.f32 -0.6931472, %v143_v27  ;;  %v145_v40 = vadd.f32 %v121_v12, %v33_v23  ;;  %v130_v41 = vsel %vm129_vm6, %v127_v5, %v124_v35  ;;  %v133_v42 = vmul.f32 0.6931472, %v809_v37  ;;  %v413_v23 = vld [vmem:[%s1214_s3 + $0x8] sm:$0xff] }
  0x2b   :  { %661 = vmatprep.mubr.f32.mxu0 %v562_v26  ;;  %v564_v39 = vadd.f32 -0.6931472, %v144_v9  ;;  %v146_v43 = vadd.f32 %v130_v41, %v34_v33  ;;  %v746_v48 = vpack.c.bf16 %v413_v23, %v412_v47  ;;  %v758_v57 = vpack.c.bf16 %v419_v56, %v418_v55 }
  0x2c   :  { %v565_v20 = vadd.f32 -0.6931472, %v145_v40  ;;  %v139_v44 = vsel %vm138_vm7, %v136_v36, %v133_v42  ;;  %v762_v60 = vpack.c.bf16 %v421_v59, %v420_v58  ;;  %v766_v0 = vpack.c.bf16 %v423_v62, %v422_v61 }
  0x2d   :  { %v566_v45 = vadd.f32 -0.6931472, %v146_v43  ;;  %v147_v24 = vadd.f32 %v139_v44, %v35_v38  ;;  %747 = vmatprep.subr.bf16.mxu1 %v746_v48  ;;  %v770_v6 = vpack.c.bf16 %v425_v4, %v424_v1  ;;  %v774_v16 = vpack.c.bf16 %v427_v13, %v426_v8 }
  0x2e   :  { %662 = vmatmul.mubr.f32.gmra.mrb[2].mxu0 %v563_v34  ;;  %749 = vmatpush3.bf16.msra.mxu1 %v746_v48 }
  0x2f   :  { %664 = vmatprep.mubr.f32.mxu0 %v564_v39  ;;  %v567_v46 = vadd.f32 -0.6931472, %v147_v24  ;;  %751 = vmatprep.subr.bf16.mxu1 %v750_v51 }
  0x32   :  { %665 = vmatmul.mubr.f32.gmra.mrb[4].mxu0 %v565_v20  ;;  %753 = vmatpush3.bf16.msra.mxu1 %v750_v51 }
  0x33   :  { %667 = vmatprep.mubr.f32.mxu0 %v566_v45  ;;  %755 = vmatprep.subr.bf16.mxu1 %v754_v54 }
  0x36   :  { %668 = vmatmul.mubr.f32.gmra.mrb[6].mxu0 %v567_v46  ;;  %757 = vmatpush3.bf16.msra.mxu1 %v754_v54 }
  0x37   :  { %759 = vmatprep.subr.bf16.mxu1 %v758_v57 }
  0x3a   :  { %761 = vmatpush3.bf16.msra.mxu1 %v758_v57 }
  0x3b   :  { %763 = vmatprep.subr.bf16.mxu1 %v762_v60 }
  0x3e   :  { %765 = vmatpush3.bf16.msra.mxu1 %v762_v60 }
  0x3f   :  { %767 = vmatprep.subr.bf16.mxu1 %v766_v0 }
  0x42   :  { %769 = vmatpush3.bf16.msra.mxu1 %v766_v0 }
  0x43   :  { %771 = vmatprep.subr.bf16.mxu1 %v770_v6 }
  0x46   :  { %773 = vmatpush3.bf16.msra.mxu1 %v770_v6 }
  0x47   :  { %775 = vmatprep.subr.bf16.mxu1 %v774_v16 }
  0x4a   :  { %777 = vmatpush3.bf16.msra.mxu1 %v774_v16 }
  0xfd   :  { %v660_v18 = vpop.f32.mrb[0].mxu0 }
  0xfe   :  { %v1093_v2 = vadd.f32 %v660_v18, %v568_v17  ;;  %v245_v19 = vpop.f32.mrb[1].mxu0 }
  0xff   :  { %v1095_v25 = vadd.f32 %v568_v17, %v245_v19 }
 0x100   :  { %v293_v63 = vand.u32 2147483647, %v1093_v2  ;;  %v285_v6 = vmax.f32 %v1093_v2, 0.0 }
 0x101   :  { %v292_v3 = vand.u32 2147483647, %v1095_v25  ;;  %v663_v26 = vpop.f32.mrb[2].mxu0  ;;  %v284_v16 = vmax.f32 %v1095_v25, 0.0 }
 0x102   :  { %v301_v27 = vsub.f32 0.0, %v293_v63  ;;  %v1099_v29 = vadd.f32 %v663_v26, %v568_v17  ;;  %v255_v5 = vpop.f32.mrb[3].mxu0 }
 0x103   :  { %v300_v7 = vsub.f32 0.0, %v292_v3  ;;  %v1101_v30 = vadd.f32 %v568_v17, %v255_v5 }
 0x104   :  { %v310_v31 = vmul.f32 1.442695, %v301_v27  ;;  %v295_v33 = vand.u32 2147483647, %v1099_v29  ;;  %v287_v5 = vmax.f32 %v1099_v29, 0.0 }
 0x105   :  { %v308_v34 = vmul.f32 1.442695, %v300_v7  ;;  %v294_v9 = vand.u32 2147483647, %v1101_v30  ;;  %v666_v35 = vpop.f32.mrb[4].mxu0  ;;  %v286_v2 = vmax.f32 %v1101_v30, 0.0 }
 0x106   :  { %810 = vpow2.f32 %v310_v31  ;;  %v303_v36 = vsub.f32 0.0, %v295_v33  ;;  %v1105_v37 = vadd.f32 %v666_v35, %v568_v17  ;;  %v265_v12 = vpop.f32.mrb[5].mxu0 }
 0x107   :  { %812 = vpow2.f32 %v308_v34  ;;  %v302_v38 = vsub.f32 0.0, %v294_v9  ;;  %v1107_v39 = vadd.f32 %v568_v17, %v265_v12 }
 0x108   :  { %v314_v40 = vmul.f32 1.442695, %v303_v36  ;;  %v297_v41 = vand.u32 2147483647, %v1105_v37  ;;  %v289_v7 = vmax.f32 %v1105_v37, 0.0 }
 0x109   :  { %v312_v42 = vmul.f32 1.442695, %v302_v38  ;;  %v296_v43 = vand.u32 2147483647, %v1107_v39  ;;  %v669_v20 = vpop.f32.mrb[6].mxu0  ;;  %v288_v25 = vmax.f32 %v1107_v39, 0.0 }
 0x10a   :  { %814 = vpow2.f32 %v314_v40  ;;  %v305_v44 = vsub.f32 0.0, %v297_v41  ;;  %v1111_v45 = vadd.f32 %v669_v20, %v568_v17  ;;  %v275_v24 = vpop.f32.mrb[7].mxu0 }
 0x10b   :  { %816 = vpow2.f32 %v312_v42  ;;  %v304_v46 = vsub.f32 0.0, %v296_v43  ;;  %v1113_v47 = vadd.f32 %v568_v17, %v275_v24 }
 0x10c   :  { %v318_v23 = vmul.f32 1.442695, %v305_v44  ;;  %v299_v48 = vand.u32 2147483647, %v1111_v45 }
 0x10d   :  { %v316_v49 = vmul.f32 1.442695, %v304_v46  ;;  %v298_v50 = vand.u32 2147483647, %v1113_v47 }
 0x10e   :  { %818 = vpow2.f32 %v318_v23  ;;  %v307_v51 = vsub.f32 0.0, %v299_v48 }
 0x10f   :  { %820 = vpow2.f32 %v316_v49  ;;  %v306_v52 = vsub.f32 0.0, %v298_v50 }
 0x110   :  { %v811_v53 = vpop.eup %810  ;;  %v322_v54 = vmul.f32 1.442695, %v307_v51 }
 0x111   :  { %v813_v55 = vpop.eup %812  ;;  %v320_v56 = vmul.f32 1.442695, %v306_v52  ;;  %v333_v57 = vadd.f32 1.0, %v811_v53  ;;  %v336_v0 = vmul.f32 -0.5, %v811_v53  ;;  %v339_v17 = vand.u32 2147483647, %v811_v53 }
 0x112   :  { %822 = vpow2.f32 %v322_v54  ;;  %v324_v58 = vadd.f32 1.0, %v813_v55  ;;  %v327_v62 = vmul.f32 -0.5, %v813_v55  ;;  %v330_v3 = vand.u32 2147483647, %v813_v55 }
 0x113   :  { %824 = vpow2.f32 %v320_v56  ;;  %v337_v26 = vadd.f32 1.0, %v336_v0  ;;  %vm1137_vm8 = vcmp.lt.f32.partialorder %v339_v17, 0.0004427343 }
 0x114   :  { %v815_v59 = vpop.eup %814  ;;  %826 = vlog2.f32 %v324_v58  ;;  %v328_v63 = vadd.f32 1.0, %v327_v62  ;;  %vm1143_vm9 = vcmp.lt.f32.partialorder %v330_v3, 0.0004427343 }
 0x115   :  { %v1117_v61 = vpop.eup %816  ;;  %828 = vlog2.f32 %v333_v57  ;;  %v351_v60 = vadd.f32 1.0, %v815_v59  ;;  %v354_v8 = vmul.f32 -0.5, %v815_v59  ;;  %v357_v34 = vand.u32 2147483647, %v815_v59 }
 0x116   :  { %v342_v1 = vadd.f32 1.0, %v1117_v61  ;;  %v345_v18 = vmul.f32 -0.5, %v1117_v61  ;;  %v329_v38 = vmul.f32 %v813_v55, %v328_v63  ;;  %v338_v41 = vmul.f32 %v811_v53, %v337_v26 }
 0x117   :  { %830 = vlog2.f32 %v351_v60  ;;  %v355_v33 = vadd.f32 1.0, %v354_v8  ;;  %v348_v44 = vand.u32 2147483647, %v1117_v61  ;;  %vm1150_vm10 = vcmp.lt.f32.partialorder %v357_v34, 0.0004427343 }
 0x118   :  { %v1120_v4 = vpop.eup %818  ;;  %832 = vlog2.f32 %v342_v1  ;;  %v346_v36 = vadd.f32 1.0, %v345_v18 }
 0x119   :  { %v1123_v13 = vpop.eup %820  ;;  %v369_v19 = vadd.f32 1.0, %v1120_v4  ;;  %v372_v29 = vmul.f32 -0.5, %v1120_v4  ;;  %v356_v23 = vmul.f32 %v815_v59, %v355_v33  ;;  %v375_v53 = vand.u32 2147483647, %v1120_v4 }
 0x11a   :  { %v360_v27 = vadd.f32 1.0, %v1123_v13  ;;  %v363_v24 = vmul.f32 -0.5, %v1123_v13  ;;  %v347_v51 = vmul.f32 %v1117_v61, %v346_v36  ;;  %vm349_vm11 = vcmp.lt.f32.partialorder %v348_v44, 0.0004427343 }
 0x11b   :  { %834 = vlog2.f32 %v369_v19  ;;  %v373_v52 = vadd.f32 1.0, %v372_v29  ;;  %v366_v8 = vand.u32 2147483647, %v1123_v13  ;;  %vm376_vm12 = vcmp.lt.f32.partialorder %v375_v53, 0.0004427343 }
 0x11c   :  { %v1132_v31 = vpop.eup %822  ;;  %836 = vlog2.f32 %v360_v27  ;;  %v364_v62 = vadd.f32 1.0, %v363_v24  ;;  %v290_v24 = vmax.f32 %v1113_v47, 0.0 }
 0x11d   :  { %v1135_v9 = vpop.eup %824  ;;  %v387_v30 = vadd.f32 1.0, %v1132_v31  ;;  %v390_v58 = vmul.f32 -0.5, %v1132_v31  ;;  %v374_v63 = vmul.f32 %v1120_v4, %v373_v52  ;;  %v393_v36 = vand.u32 2147483647, %v1132_v31 }
 0x11e   :  { %v827_v12 = vpop.eup %826  ;;  %v378_v42 = vadd.f32 1.0, %v1135_v9  ;;  %v381_v0 = vmul.f32 -0.5, %v1135_v9  ;;  %v365_v34 = vmul.f32 %v1123_v13, %v364_v62  ;;  %vm367_vm13 = vcmp.lt.f32.partialorder %v366_v8, 0.0004427343 }
 0x11f   :  { %v829_v43 = vpop.eup %828  ;;  %v326_v20 = vmul.f32 0.6931472, %v827_v12  ;;  %838 = vlog2.f32 %v387_v30  ;;  %v391_v27 = vadd.f32 1.0, %v390_v58  ;;  %vm394_vm14 = vcmp.lt.f32.partialorder %v393_v36, 0.0004427343 }
 0x120   :  { %v335_v46 = vmul.f32 0.6931472, %v829_v43  ;;  %840 = vlog2.f32 %v378_v42  ;;  %v382_v35 = vadd.f32 1.0, %v381_v0  ;;  %v291_v43 = vmax.f32 %v1111_v45, 0.0  ;;  %v577_v45 = vld [vmem:[%s1216_s4] ss:$0 sm:$0xff] }
 0x121   :  { %v831_v49 = vpop.eup %830  ;;  %v332_v50 = vsel %vm1143_vm9, %v329_v38, %v326_v20  ;;  %v392_v42 = vmul.f32 %v1132_v31, %v391_v27 }
 0x122   :  { %v833_v54 = vpop.eup %832  ;;  %v396_v55 = vadd.f32 %v332_v50, %v284_v16  ;;  %v341_v56 = vsel %vm1137_vm8, %v338_v41, %v335_v46  ;;  %v353_v57 = vmul.f32 0.6931472, %v831_v49  ;;  %v383_v44 = vmul.f32 %v1135_v9, %v382_v35 }
 0x123   :  { %v397_v59 = vadd.f32 %v341_v56, %v285_v6  ;;  %v344_v60 = vmul.f32 0.6931472, %v833_v54 }
 0x124   :  { %v569_v1 = vadd.f32 -0.6931472, %v396_v55  ;;  %v359_v61 = vsel %vm1150_vm10, %v356_v23, %v353_v57 }
 0x125   :  { %v835_v17 = vpop.eup %834  ;;  %v570_v16 = vadd.f32 -0.6931472, %v397_v59  ;;  %v350_v18 = vsel %vm349_vm11, %v347_v51, %v344_v60  ;;  %v399_v19 = vadd.f32 %v359_v61, %v287_v5  ;;  %v384_v5 = vand.u32 2147483647, %v1135_v9 }
 0x126   :  { %v837_v3 = vpop.eup %836  ;;  %702 = vmatprep.mubr.f32.mxu1 %v569_v1  ;;  %v398_v6 = vadd.f32 %v350_v18, %v286_v2  ;;  %v371_v26 = vmul.f32 0.6931472, %v835_v17 }
 0x127   :  { %703 = vmatmul.mubr.f32.vlgmr.msra.gmra.mrb[0].mxu1 %v570_v16  ;;  %v362_v33 = vmul.f32 0.6931472, %v837_v3  ;;  %v572_v4 = vadd.f32 -0.6931472, %v399_v19  ;;  %vm385_vm15 = vcmp.lt.f32.partialorder %v384_v5, 0.0004427343 }
 0x128   :  { %v571_v29 = vadd.f32 -0.6931472, %v398_v6  ;;  %v377_v30 = vsel %vm376_vm12, %v374_v63, %v371_v26 }
 0x129   :  { %v839_v12 = vpop.eup %838  ;;  %v368_v38 = vsel %vm367_vm13, %v365_v34, %v362_v33  ;;  %v401_v2 = vadd.f32 %v377_v30, %v289_v7 }
 0x12a   :  { %v841_v40 = vpop.eup %840  ;;  %705 = vmatprep.mubr.f32.mxu1 %v571_v29  ;;  %v400_v41 = vadd.f32 %v368_v38, %v288_v25  ;;  %v389_v13 = vmul.f32 0.6931472, %v839_v12 }
 0x12b   :  { %706 = vmatmul.mubr.f32.gmra.mrb[2].mxu1 %v572_v4  ;;  %v380_v20 = vmul.f32 0.6931472, %v841_v40  ;;  %v574_v7 = vadd.f32 -0.6931472, %v401_v2 }
 0x12c   :  { %v573_v46 = vadd.f32 -0.6931472, %v400_v41  ;;  %v395_v37 = vsel %vm394_vm14, %v392_v42, %v389_v13 }
 0x12d   :  { %v386_v23 = vsel %vm385_vm15, %v383_v44, %v380_v20  ;;  %v403_v48 = vadd.f32 %v395_v37, %v291_v43 }
 0x12e   :  { %708 = vmatprep.mubr.f32.mxu1 %v573_v46  ;;  %v402_v39 = vadd.f32 %v386_v23, %v290_v24 }
 0x12f   :  { %709 = vmatmul.mubr.f32.gmra.mrb[4].mxu1 %v574_v7  ;;  %v576_v31 = vadd.f32 -0.6931472, %v403_v48 }
 0x130   :  { %v575_v25 = vadd.f32 -0.6931472, %v402_v39 }
 0x132   :  { %711 = vmatprep.mubr.f32.mxu1 %v575_v25 }
 0x133   :  { %712 = vmatmul.mubr.f32.gmra.mrb[6].mxu1 %v576_v31 }
 0x1fa   :  { %v704_v9 = vpop.f32.mrb[0].mxu1 }
 0x1fb   :  { %v507_v49 = vadd.f32 %v704_v9, %v577_v45  ;;  %v501_v47 = vpop.f32.mrb[1].mxu1 }
 0x1fc   :  { %v502_v50 = vadd.f32 %v577_v45, %v501_v47 }
 0x1fd   :  { %v541_v51 = vadd.f32 %v507_v49, %v901_v11 }
 0x1fe   :  { %v540_v52 = vadd.f32 %v502_v50, %v896_v10  ;;  %v707_v53 = vpop.f32.mrb[2].mxu1 }
 0x1ff   :  { %549 = vst [vmem:[%s1217_s5 + $0x8] sm:$0xff] %v541_v51  ;;  %v517_v54 = vadd.f32 %v707_v53, %v577_v45  ;;  %v511_v55 = vpop.f32.mrb[3].mxu1 }
 0x200   :  { %548 = vst [vmem:[%s1217_s5] sm:$0xff] %v540_v52  ;;  %v512_v56 = vadd.f32 %v577_v45, %v511_v55 }
 0x201   :  { %v543_v57 = vadd.f32 %v517_v54, %v915_v15 }
 0x202   :  { %v542_v58 = vadd.f32 %v512_v56, %v910_v14  ;;  %v710_v59 = vpop.f32.mrb[4].mxu1 }
 0x203   :  { %551 = vst [vmem:[%s1217_s5 + $0x18] sm:$0xff] %v543_v57  ;;  %v527_v10 = vadd.f32 %v710_v59, %v577_v45  ;;  %v521_v11 = vpop.f32.mrb[5].mxu1 }
 0x204   :  { %550 = vst [vmem:[%s1217_s5 + $0x10] sm:$0xff] %v542_v58  ;;  %v522_v60 = vadd.f32 %v577_v45, %v521_v11 }
 0x205   :  { %v545_v62 = vadd.f32 %v527_v10, %v931_v22 }
 0x206   :  { %v544_v0 = vadd.f32 %v522_v60, %v926_v21  ;;  %v713_v1 = vpop.f32.mrb[6].mxu1 }
 0x207   :  { %553 = vst [vmem:[%s1217_s5 + $0x28] sm:$0xff] %v545_v62  ;;  %v537_v14 = vadd.f32 %v713_v1, %v577_v45  ;;  %v531_v15 = vpop.f32.mrb[7].mxu1 }
 0x208   :  { %552 = vst [vmem:[%s1217_s5 + $0x20] sm:$0xff] %v544_v0  ;;  %v532_v61 = vadd.f32 %v577_v45, %v531_v15 }
 0x209   :  { %v547_v8 = vadd.f32 %v537_v14, %v946_v32 }
 0x20a   :  { %v546_v17 = vadd.f32 %v532_v61, %v940_v28 }
 0x20b   :  { %555 = vst [vmem:[%s1217_s5 + $0x38] sm:$0xff] %v547_v8 }
 0x20c   :  { %554 = vst [vmem:[%s1217_s5 + $0x30] sm:$0xff] %v546_v17 }

</bundles_post_ra>
